<compile_context>
chip_gen: v7x
topology: tpu7x:2x2x1
jax: 0.10.0
libtpu: 0.0.40
codegen_flags: <defaults>
</compile_context>

<pallas_src>
import functools

import jax
import jax.numpy as jnp
from jax.experimental import pallas as pl
from jax.experimental.pallas import tpu as pltpu


def _round_up(x, m):
    return ((x + m - 1) // m) * m


# ---------------------------------------------------------------------------
# Kernels
# ---------------------------------------------------------------------------

def _ffn_kernel_stream(x_ref, w13_ref, w2_ref, o_ref, acc_ref, *, tn):
    """Streamed-hidden step: grid=(rows, hidden_tiles), resident f32 acc.

    x_ref  : (tm, dim)      input row tile (same block for every j)
    w13_ref: (dim, 2*tn)    fused [w1 tile j | w3 tile j]
    w2_ref : (tn, dim)      w2 tile j
    o_ref  : (tm, dim)      output row tile (written on last hidden step)
    acc_ref: (tm, dim) f32  accumulator, resident across the j axis
    """
    j = pl.program_id(1)

    @pl.when(j == 0)
    def _():
        acc_ref[...] = jnp.zeros_like(acc_ref)

    x = x_ref[...]
    # Fused gate/up projection: one weight stream, native dtype on the MXU,
    # f32 accumulation.
    h13 = jnp.dot(x, w13_ref[...], preferred_element_type=jnp.float32)
    h1 = h13[:, :tn]          # tn is a multiple of 128 -> lane-aligned slices
    h3 = h13[:, tn:]
    h = (h1 * jax.nn.sigmoid(h1)) * h3   # SiLU on VPU/EUP in f32

    acc_ref[...] += jnp.dot(h.astype(w2_ref.dtype), w2_ref[...],
                            preferred_element_type=jnp.float32)

    @pl.when(j == pl.num_programs(1) - 1)
    def _():
        o_ref[...] = acc_ref[...].astype(o_ref.dtype)


def _ffn_kernel_single(x_ref, w13_ref, w2_ref, o_ref, *, tn):
    """Whole hidden dim in one tile: no accumulator scratch, direct store."""
    x = x_ref[...]
    h13 = jnp.dot(x, w13_ref[...], preferred_element_type=jnp.float32)
    h1 = h13[:, :tn]
    h3 = h13[:, tn:]
    h = (h1 * jax.nn.sigmoid(h1)) * h3
    o_ref[...] = jnp.dot(h.astype(w2_ref.dtype), w2_ref[...],
                         preferred_element_type=jnp.float32).astype(o_ref.dtype)


# ---------------------------------------------------------------------------
# Generation-aware helpers
# ---------------------------------------------------------------------------

def _tpu_vmem_capacity_bytes():
    try:
        return int(pltpu.get_tpu_info().vmem_capacity_bytes)
    except Exception:
        return 64 << 20   # conservative: v7x per-TensorCore VMEM


def _tpu_num_cores():
    try:
        d = jax.devices()[0]
        for attr in ("num_cores", "core_count", "num_tensorcores"):
            v = getattr(d, attr, None)
            if isinstance(v, int) and v > 0:
                return v
    except Exception:
        pass
    return 1


def default_tiles():
    """(row tile target, hidden tile target) keyed off chip VMEM capacity."""
    cap = _tpu_vmem_capacity_bytes()
    if cap >= (96 << 20):      # v5e / v6e: 128 MiB VMEM
        return 1024, 512
    return 512, 512             # v7x: 64 MiB VMEM per TensorCore


# ---------------------------------------------------------------------------
# One-time weight preparation (call at load time, NOT per forward)
# ---------------------------------------------------------------------------

def prepare_ffn_weights(w1_t, w3_t, w2_t, *, tn=None):
    """Fuse/pad the FFN weights once.

    w1_t, w3_t : (dim, hidden)  pre-transposed Linear weights
    w2_t       : (hidden, dim)

    Pads hidden once to a multiple of the hidden tile (zero columns/rows are
    inert) and interleaves w1/w3 per hidden tile so the kernel streams one
    fused gate+up block per step:
        w13[:, 2*j*tn : 2*(j+1)*tn] = [ w1 tile j | w3 tile j ]
    Returns (w13, w2p, tn_eff).
    """
    dim, hidden = w1_t.shape
    if tn is None:
        tn = default_tiles()[1]
    h128 = _round_up(hidden, 128)
    tn_eff = h128 if h128 <= tn else _round_up(tn, 128)
    h_pad = _round_up(hidden, tn_eff)

    pad = h_pad - hidden
    w1p = jnp.pad(w1_t, ((0, 0), (0, pad))) if pad else w1_t
    w3p = jnp.pad(w3_t, ((0, 0), (0, pad))) if pad else w3_t
    w2p = jnp.pad(w2_t, ((0, pad), (0, 0))) if pad else w2_t

    n_tiles = h_pad // tn_eff
    w13 = jnp.concatenate(
        [w1p.reshape(dim, n_tiles, tn_eff), w3p.reshape(dim, n_tiles, tn_eff)],
        axis=2,
    ).reshape(dim, n_tiles * 2 * tn_eff)
    return w13, w2p, tn_eff


# ---------------------------------------------------------------------------
# Forward
# ---------------------------------------------------------------------------

@functools.partial(jax.jit, static_argnames=("tn", "tm"))
def feed_forward(x, w13, w2p, *, tn, tm=None):
    """x: (batch, seq, dim); (w13, w2p, tn) come from prepare_ffn_weights."""
    batch, seq, dim = x.shape
    h_pad = w2p.shape[0]
    assert w13.shape == (dim, 2 * h_pad) and h_pad % tn == 0
    n_j = h_pad // tn
    M = batch * seq

    x_isz = jnp.dtype(x.dtype).itemsize
    w_isz = jnp.dtype(w13.dtype).itemsize
    # Sublane packing: 8 rows for 4-byte, 16 for bf16, 32 for 1-byte dtypes.
    gran = 8 if x_isz >= 4 else (16 if x_isz == 2 else 32)

    vmem_cap = _tpu_vmem_capacity_bytes()
    if tm is None:
        tm = default_tiles()[0]

    # Row tile: as large as possible (amortizes weight re-streaming), clamped
    # to the row count and rounded to the packing granularity.
    tm_eff = max(gran, min(_round_up(tm, gran), _round_up(M, gran)))

    # Megacore (v7x): give every TensorCore at least one row block.
    n_cores = _tpu_num_cores()
    if n_cores > 1 and M > gran:
        tm_eff = min(tm_eff, max(gran, _round_up(-(-M // n_cores), gran)))

    # Shrink the row tile until the double-buffered working set fits VMEM.
    def vmem_need(t):
        return (2 * t * dim * x_isz            # x tile (double buffered)
                + 2 * dim * 2 * tn * w_isz     # fused w1|w3 tile
                + 2 * tn * dim * w_isz         # w2 tile
                + 2 * t * dim * x_isz          # output tile
                + t * dim * 4                  # f32 accumulator scratch
                + 3 * t * tn * 4)              # h13 / h intermediates
    budget = vmem_cap - (8 << 20)
    while vmem_need(tm_eff) > budget and tm_eff > gran:
        tm_eff = max(gran, _round_up(tm_eff // 2, gran))

    m_pad = _round_up(M, tm_eff)
    grid_i = m_pad // tm_eff

    x2d = x.reshape(M, dim)
    if m_pad != M:
        x2d = jnp.pad(x2d, ((0, m_pad - M), (0, 0)))

    vmem_limit = int(min(max(vmem_need(tm_eff) + (8 << 20), 32 << 20),
                         vmem_cap - (2 << 20)))

    cost = pl.CostEstimate(
        flops=6 * m_pad * dim * h_pad,                 # gate+up+down matmuls
        transcendentals=m_pad * h_pad,                 # sigmoid
        bytes_accessed=(2 * M * dim * x_isz            # x in + y out
                        + grid_i * 3 * dim * h_pad * w_isz),  # weights re-read per row tile
    )
    compiler_params_1d = pltpu.CompilerParams(
        dimension_semantics=("parallel",), vmem_limit_bytes=vmem_limit)
    compiler_params_2d = pltpu.CompilerParams(
        dimension_semantics=("parallel", "arbitrary"), vmem_limit_bytes=vmem_limit)

    if n_j == 1:
        # Whole hidden dim in one tile: skip the accumulator path entirely.
        out2d = pl.pallas_call(
            functools.partial(_ffn_kernel_single, tn=tn),
            out_shape=jax.ShapeDtypeStruct((m_pad, dim), x.dtype),
            grid_spec=pltpu.PrefetchScalarGridSpec(
                num_scalar_prefetch=0,
                grid=(grid_i,),
                in_specs=[
                    pl.BlockSpec((tm_eff, dim), lambda i: (i, 0)),   # x rows
                    pl.BlockSpec((dim, 2 * tn), lambda i: (0, 0)),   # fused w1|w3
                    pl.BlockSpec((tn, dim), lambda i: (0, 0)),       # w2
                ],
                out_specs=pl.BlockSpec((tm_eff, dim), lambda i: (i, 0)),
            ),
            compiler_params=compiler_params_1d,
            cost_estimate=cost,
        )(x2d, w13, w2p)
    else:
        out2d = pl.pallas_call(
            functools.partial(_ffn_kernel_stream, tn=tn),
            out_shape=jax.ShapeDtypeStruct((m_pad, dim), x.dtype),
            grid_spec=pltpu.PrefetchScalarGridSpec(
                num_scalar_prefetch=0,
                grid=(grid_i, n_j),
                in_specs=[
                    pl.BlockSpec((tm_eff, dim), lambda i, j: (i, 0)),   # x rows
                    pl.BlockSpec((dim, 2 * tn), lambda i, j: (0, j)),   # fused w1|w3 tile
                    pl.BlockSpec((tn, dim), lambda i, j: (j, 0)),       # w2 tile
                ],
                out_specs=pl.BlockSpec((tm_eff, dim), lambda i, j: (i, 0)),
                scratch_shapes=[pltpu.VMEM((tm_eff, dim), jnp.float32)],
            ),
            compiler_params=compiler_params_2d,
            cost_estimate=cost,
        )(x2d, w13, w2p)

    if m_pad != M:
        out2d = out2d[:M]
    return out2d.reshape(batch, seq, dim)


# ---------------------------------------------------------------------------
# Reference / init helpers
# ---------------------------------------------------------------------------

def _llama_hidden_dim(dim, hidden_dim, multiple_of):
    if hidden_dim is None:
        hidden_dim = 4 * dim
        hidden_dim = int(2 * hidden_dim / 3)
        hidden_dim = multiple_of * ((hidden_dim + multiple_of - 1) // multiple_of)
    return hidden_dim


def init_params(key, dim, hidden_dim, multiple_of):
    """Deterministic init mimicking nn.Linear's kaiming-uniform bound."""
    hidden = _llama_hidden_dim(dim, hidden_dim, multiple_of)
    k1, k2, k3 = jax.random.split(key, 3)

    def linear_w(k, in_f, out_f):
        bound = 1.0 / (in_f ** 0.5)
        w = jax.random.uniform(k, (out_f, in_f), jnp.float32, -bound, bound)
        return w.T  # store pre-transposed as (in_f, out_f)

    w1_t = linear_w(k1, dim, hidden)
    w2_t = linear_w(k2, hidden, dim)
    w3_t = linear_w(k3, dim, hidden)
    return w1_t, w2_t, w3_t, hidden


def feed_forward_ref(x, w1_t, w3_t, w2_t):
    """Pure-JAX reference (dropout = identity in eval mode)."""
    h1 = x @ w1_t
    h3 = x @ w3_t
    h = (h1 * jax.nn.sigmoid(h1)) * h3
    return h @ w2_t


if __name__ == "__main__":
    key = jax.random.PRNGKey(0)

    # ---- Test 1: f32, single hidden tile (batch=2, seq=8, dim=32, hidden=96)
    batch, seq, dim, multiple_of = 2, 8, 32, 32
    kx, kw, key = jax.random.split(key, 3)
    x = jax.random.normal(kx, (batch, seq, dim), jnp.float32)
    w1_t, w2_t, w3_t, hidden = init_params(kw, dim, None, multiple_of)

    w13, w2p, tn_eff = prepare_ffn_weights(w1_t, w3_t, w2_t)
    y = jax.block_until_ready(feed_forward(x, w13, w2p, tn=tn_eff))
    y_ref = feed_forward_ref(x, w1_t, w3_t, w2_t)
    assert y.shape == (batch, seq, dim)
    assert jnp.allclose(y, y_ref, atol=1e-4, rtol=1e-4), "f32 single-tile mismatch"

    # ---- Test 2: f32, streamed hidden path (dim=128, hidden=384, tn=128)
    b2, s2, d2, mo2 = 2, 16, 128, 128
    kx2, kw2, key = jax.random.split(key, 3)
    x2 = jax.random.normal(kx2, (b2, s2, d2), jnp.float32)
    w1b, w2b, w3b, hid2 = init_params(kw2, d2, None, mo2)
    w13b, w2pb, tnb = prepare_ffn_weights(w1b, w3b, w2b, tn=128)  # forces 3 hidden tiles
    y2 = jax.block_until_ready(feed_forward(x2, w13b, w2pb, tn=tnb))
    y2_ref = feed_forward_ref(x2, w1b, w3b, w2b)
    assert y2.shape == (b2, s2, d2)
    assert jnp.allclose(y2, y2_ref, atol=1e-3, rtol=1e-3), "f32 streamed mismatch"

    # ---- Test 3: bf16 path (numerically checked against f32 reference)
    xb = x.astype(jnp.bfloat16)
    w13h, w2ph, tnh = prepare_ffn_weights(
        w1_t.astype(jnp.bfloat16), w3_t.astype(jnp.bfloat16),
        w2_t.astype(jnp.bfloat16))
    yb = jax.block_until_ready(feed_forward(xb, w13h, w2ph, tn=tnh))
    yb_ref = feed_forward_ref(xb.astype(jnp.float32),
                              w1_t.astype(jnp.bfloat16).astype(jnp.float32),
                              w3_t.astype(jnp.bfloat16).astype(jnp.float32),
                              w2_t.astype(jnp.bfloat16).astype(jnp.float32))
    assert yb.shape == (batch, seq, dim)
    assert jnp.allclose(yb.astype(jnp.float32), yb_ref, atol=6e-2, rtol=6e-2), \
        "bf16 mismatch"

    print("KERNEL_OK")
</pallas_src>

<mosaic_0001>
module attributes {stable_mosaic.version = 11 : i64} {
  func.func @_ffn_kernel_single(%arg0: i32, %arg1: memref<16x32xf32, #tpu.memory_space<vmem>>, %arg2: memref<32x256xf32, #tpu.memory_space<vmem>>, %arg3: memref<128x32xf32, #tpu.memory_space<vmem>>, %arg4: memref<16x32xf32, #tpu.memory_space<vmem>>) attributes {dimension_semantics = [#tpu.dimension_semantics<parallel>], iteration_bounds = array<i64: 1>, scalar_prefetch = 0 : i64, scratch_operands = 0 : i64, tpu.core_type = #tpu.core_type<tc>, window_params = [{transform_indices = @transform_0, window_bounds = array<i64: 16, 32>}, {pipeline_mode = #tpu.pipeline_mode<synchronous>, transform_indices = @transform_1, window_bounds = array<i64: 32, 256>}, {pipeline_mode = #tpu.pipeline_mode<synchronous>, transform_indices = @transform_2, window_bounds = array<i64: 128, 32>}, {transform_indices = @transform_3, window_bounds = array<i64: 16, 32>}]} {
    %c0 = arith.constant 0 : index
    %c0_0 = arith.constant 0 : index
    %0 = vector.load %arg1[%c0, %c0_0] : memref<16x32xf32, #tpu.memory_space<vmem>>, vector<16x32xf32>
    %c0_1 = arith.constant 0 : index
    %c0_2 = arith.constant 0 : index
    %1 = vector.load %arg2[%c0_1, %c0_2] : memref<32x256xf32, #tpu.memory_space<vmem>>, vector<32x256xf32>
    %cst = arith.constant dense<0.000000e+00> : vector<16x256xf32>
    %2 = tpu.matmul %0, %1, %cst {dimension_numbers = #tpu.dot_dimension_numbers<[1], [0], [0], [1], [0, 0, 1, 1], [], []>} : vector<16x32xf32>, vector<32x256xf32>, vector<16x256xf32> -> vector<16x256xf32>
    %3 = vector.extract_strided_slice %2 {offsets = [0, 0], sizes = [16, 128], strides = [1, 1]} : vector<16x256xf32> to vector<16x128xf32>
    %4 = vector.extract_strided_slice %2 {offsets = [0, 128], sizes = [16, 128], strides = [1, 1]} : vector<16x256xf32> to vector<16x128xf32>
    %5 = arith.negf %3 : vector<16x128xf32>
    %6 = math.exp %5 : vector<16x128xf32>
    %cst_3 = arith.constant 1.000000e+00 : f32
    %7 = vector.broadcast %cst_3 : f32 to vector<16x128xf32>
    %8 = arith.addf %7, %6 : vector<16x128xf32>
    %9 = arith.divf %7, %8 : vector<16x128xf32>
    %10 = arith.mulf %3, %9 : vector<16x128xf32>
    %11 = arith.mulf %10, %4 : vector<16x128xf32>
    %c0_4 = arith.constant 0 : index
    %c0_5 = arith.constant 0 : index
    %12 = vector.load %arg3[%c0_4, %c0_5] : memref<128x32xf32, #tpu.memory_space<vmem>>, vector<128x32xf32>
    %cst_6 = arith.constant dense<0.000000e+00> : vector<16x32xf32>
    %13 = tpu.matmul %11, %12, %cst_6 {dimension_numbers = #tpu.dot_dimension_numbers<[1], [0], [0], [1], [0, 0, 1, 1], [], []>} : vector<16x128xf32>, vector<128x32xf32>, vector<16x32xf32> -> vector<16x32xf32>
    %c0_7 = arith.constant 0 : index
    %c0_8 = arith.constant 0 : index
    %14 = vector.load %arg4[%c0_7, %c0_8] : memref<16x32xf32, #tpu.memory_space<vmem>>, vector<16x32xf32>
    tpu.vector_store %arg4[%c0_7, %c0_8], %13 {strides = array<i32>} : memref<16x32xf32, #tpu.memory_space<vmem>>, vector<16x32xf32>,
    return
  }
  func.func @transform_0(%arg0: i32) -> (i32, i32) {
    %c0_i32 = arith.constant 0 : i32
    %c0_i32_0 = arith.constant 0 : i32
    return %arg0, %c0_i32 : i32, i32
  }
  func.func @transform_1(%arg0: i32) -> (i32, i32) {
    %c0_i32 = arith.constant 0 : i32
    %c0_i32_0 = arith.constant 0 : i32
    %c0_i32_1 = arith.constant 0 : i32
    return %c0_i32, %c0_i32_0 : i32, i32
  }
  func.func @transform_2(%arg0: i32) -> (i32, i32) {
    %c0_i32 = arith.constant 0 : i32
    %c0_i32_0 = arith.constant 0 : i32
    %c0_i32_1 = arith.constant 0 : i32
    return %c0_i32, %c0_i32_0 : i32, i32
  }
  func.func @transform_3(%arg0: i32) -> (i32, i32) {
    %c0_i32 = arith.constant 0 : i32
    %c0_i32_0 = arith.constant 0 : i32
    return %arg0, %c0_i32 : i32, i32
  }
}

</mosaic_0001>

<bundles_post_ra>
// kernel: feed_forward.1
= control target key start
LH: loop header
LB: loop body
LE: loop exit
PB: predicated region body
PF: predicated region fallthrough
CT: control target
= control target key end

     0   :  { %v367_v7 = vmov 0.0   ;;  %s485_s0 = inlined_call_operand.vmem [shape: f32[16,32], index: 0, kind: input, shape index: {}]   ;;  %s486_s1 = inlined_call_operand.vmem [shape: f32[32,256], index: 1, kind: input, shape index: {}]   ;;  %s487_s2 = inlined_call_operand.vmem [shape: f32[128,32], index: 2, kind: input, shape index: {}]   ;;  %s488_s3 = inlined_call_operand.hbm [shape: f32[16,32], index: 3, kind: output, shape index: {}]  }
   0x1   :  { %v18_v0 = vld [vmem:[%s486_s1 + $0x8] sm:$0xff]  ;;  %v20_v1 = vld [vmem:[%s486_s1 + $0x18] sm:$0xff]  ;;  %v17_v2 = vld [vmem:[%s486_s1] sm:$0xff]  ;;  %96 = vmatprep.mubr.f32.mxu0 %v367_v7 }
   0x2   :  { %v291_v3 = vpack.c.bf16 %v20_v1, %v18_v0  ;;  %v19_v4 = vld [vmem:[%s486_s1 + $0x10] sm:$0xff]  ;;  %v22_v5 = vld [vmem:[%s486_s1 + $0x28] sm:$0xff]  ;;  %v24_v6 = vld [vmem:[%s486_s1 + $0x38] sm:$0xff] }
   0x3   :  { %v293_v8 = vpack.c.bf16 %v19_v4, %v17_v2  ;;  %v295_v9 = vpack.c.bf16 %v24_v6, %v22_v5  ;;  %v21_v10 = vld [vmem:[%s486_s1 + $0x20] sm:$0xff]  ;;  %v23_v11 = vld [vmem:[%s486_s1 + $0x30] sm:$0xff] }
   0x4   :  { %292 = vmatprep.subr.bf16.mxu0 %v291_v3 }
   0x5   :  { %8 = vsyncpa [#allocation3], 0  ;;  %294 = vmatpush1.bf16.msra.mxu0 %v293_v8  ;;  %v297_v12 = vpack.c.bf16 %v23_v11, %v21_v10  ;;  %v15_v13 = vld [vmem:[%s485_s0] sm:$0xff]  ;;  %vm25_vm0 = vcmask 261120   ;;  %v16_v14 = vld [vmem:[%s485_s0 + $0x8] sm:$0xff] }
   0x6   :  { %296 = vmatprep.subr.bf16.mxu0 %v295_v9  ;;  %v125_v15 = vld [vmem:[%s487_s2] sm:$0xff]  ;;  %v126_v16 = vld [vmem:[%s487_s2 + $0x8] sm:$0xff]  ;;  %v127_v18 = vld [vmem:[%s487_s2 + $0x10] sm:$0xff] }
   0x7   :  { %v299_v17 = vpack.c.bf16 %v126_v16, %v125_v15  ;;  %v128_v19 = vld [vmem:[%s487_s2 + $0x18] sm:$0xff]  ;;  %v129_v21 = vld [vmem:[%s487_s2 + $0x20] sm:$0xff]  ;;  %v130_v22 = vld [vmem:[%s487_s2 + $0x28] sm:$0xff] }
   0x8   :  { %v303_v20 = vpack.c.bf16 %v128_v19, %v127_v18  ;;  %v307_v23 = vpack.c.bf16 %v130_v22, %v129_v21  ;;  %v131_v24 = vld [vmem:[%s487_s2 + $0x30] sm:$0xff]  ;;  %v132_v25 = vld [vmem:[%s487_s2 + $0x38] sm:$0xff]  ;;  %v133_v27 = vld [vmem:[%s487_s2 + $0x40] sm:$0xff] }
   0x9   :  { %298 = vmatpush1.bf16.msra.mxu0 %v297_v12  ;;  %300 = vmatprep.subr.bf16.mxu1 %v299_v17  ;;  %v311_v26 = vpack.c.bf16 %v132_v25, %v131_v24  ;;  %v134_v28 = vld [vmem:[%s487_s2 + $0x48] sm:$0xff]  ;;  %v135_v30 = vld [vmem:[%s487_s2 + $0x50] sm:$0xff]  ;;  %v136_v31 = vld [vmem:[%s487_s2 + $0x58] sm:$0xff] }
   0xa   :  { %302 = vmatpush3.bf16.msra.mxu1 %v299_v17  ;;  %v315_v29 = vpack.c.bf16 %v134_v28, %v133_v27  ;;  %v319_v32 = vpack.c.bf16 %v136_v31, %v135_v30  ;;  %v137_v33 = vld [vmem:[%s487_s2 + $0x60] sm:$0xff]  ;;  %v138_v34 = vld [vmem:[%s487_s2 + $0x68] sm:$0xff]  ;;  %v139_v36 = vld [vmem:[%s487_s2 + $0x70] sm:$0xff] }
   0xb   :  { %304 = vmatprep.subr.bf16.mxu1 %v303_v20  ;;  %v323_v35 = vpack.c.bf16 %v138_v34, %v137_v33  ;;  %v140_v37 = vld [vmem:[%s487_s2 + $0x78] sm:$0xff]  ;;  %s368_s2 = smov [#allocation2]  }
   0xc   :  { %234 = vmatmul.mubr.msk.f32.vlgmr.msra.gmra.mrb[0].mxu0 %vm25_vm0, %v15_v13  ;;  %v327_v38 = vpack.c.bf16 %v140_v37, %v139_v36  ;;  %s223_s7 = sshll.u32 %s368_s2, 4  ;;  %s224_s7 = int_to_ptr.vmem [resolvable:$true] %s223_s7 }
   0xd   :  { %102 = vmatprep.mubr.f32.mxu0 %v367_v7  ;;  %s343_s8 = scalar_lea.vmem %s224_s7, 256  ;;  %p348_p1 = scmp.lt.s32.totalorder %s224_s7, %s224_s7 }
   0xe   :  { %306 = vmatpush3.bf16.msra.mxu1 %v303_v20  ;;  %p344_p0 = scmp.ne.s32.totalorder %s224_s7, %s343_s8  ;;  %p349_p2 = scmp.lt.s32.totalorder %s343_s8, %s343_s8 }
   0xf   :  { %308 = vmatprep.subr.bf16.mxu1 %v307_v23 }
  0x10   :  { %235 = vmatmul.mubr.msk.f32.gmra.mrb[2].mxu0 %vm25_vm0, %v16_v14  ;;  %p350_p3 = por %p349_p2, %p348_p1 }
  0x12   :  { %310 = vmatpush3.bf16.msra.mxu1 %v307_v23  ;;  %p351_p4 = pnand %p350_p3, %p344_p0 }
  0x13   :  { %312 = vmatprep.subr.bf16.mxu1 %v311_v26 }
  0x16   :  { %314 = vmatpush3.bf16.msra.mxu1 %v311_v26 }
  0x17   :  { %316 = vmatprep.subr.bf16.mxu1 %v315_v29 }
  0x1a   :  { %318 = vmatpush3.bf16.msra.mxu1 %v315_v29 }
  0x1b   :  { %320 = vmatprep.subr.bf16.mxu1 %v319_v32 }
  0x1e   :  { %322 = vmatpush3.bf16.msra.mxu1 %v319_v32 }
  0x1f   :  { %324 = vmatprep.subr.bf16.mxu1 %v323_v35 }
  0x22   :  { %326 = vmatpush3.bf16.msra.mxu1 %v323_v35 }
  0x23   :  { %328 = vmatprep.subr.bf16.mxu1 %v327_v38 }
  0x26   :  { %330 = vmatpush3.bf16.msra.mxu1 %v327_v38 }
  0xdf   :  { %v98_v39 = vpop.f32.mrb[0].mxu0 }
  0xe0   :  { %v236_v40 = vmul.f32 -1.442695, %v98_v39  ;;  %v100_v41 = vpop.f32.mrb[1].mxu0 }
  0xe2   :  { %335 = vpow2.f32 %v236_v40 }
  0xe3   :  { %v104_v42 = vpop.f32.mrb[2].mxu0 }
  0xe4   :  { %v237_v43 = vmul.f32 -1.442695, %v104_v42  ;;  %v106_v44 = vpop.f32.mrb[3].mxu0 }
  0xe6   :  { %337 = vpow2.f32 %v237_v43 }
  0xec   :  { %v336_v45 = vpop.eup %335 }
  0xed   :  { %v115_v46 = vadd.f32 1.0, %v336_v45 }
  0xef   :  { %339 = vrcp.f32 %v115_v46 }
  0xf0   :  { %v338_v47 = vpop.eup %337 }
  0xf1   :  { %v116_v48 = vadd.f32 1.0, %v338_v47 }
  0xf3   :  { %341 = vrcp.f32 %v116_v48 }
  0xf9   :  { %v340_v49 = vpop.eup %339 }
  0xfa   :  { %v121_v50 = vmul.f32 %v340_v49, %v98_v39 }
  0xfc   :  { %v123_v51 = vmul.f32 %v121_v50, %v100_v41 }
  0xfd   :  { %v342_v52 = vpop.eup %341 }
  0xfe   :  { %v122_v53 = vmul.f32 %v342_v52, %v104_v42  ;;  %288 = vmatprep.mubr.f32.mxu1 %v123_v51 }
 0x100   :  { %v124_v54 = vmul.f32 %v122_v53, %v106_v44 }
 0x102   :  { %289 = vmatmul.mubr.f32.vlgmr.msra.gmra.mrb[0].mxu1 %v124_v54 }
 0x1d5   :  { %v290_v55 = vpop.f32.mrb[0].mxu1 }
 0x1d6   :  { %217 = vst.msk [vmem:[#allocation2 + $0x8] sm:$0xff] %vm25_vm0, %v290_v55  ;;  %v207_v56 = vpop.f32.mrb[1].mxu1 }
 0x1d7   :  { %216 = vst.msk [vmem:[#allocation2] sm:$0xff] %vm25_vm0, %v207_v56 }
 0x1d8   :  { %354 = shalt.err (!%p351_p4)
}
 0x1d9   :  { %s355_s11 = scalar_lea.hbm %s488_s3, 256 }
 0x1da   :  { %p356_p5 = scmp.ne.s32.totalorder %s488_s3, %s355_s11  ;;  %p359_p6 = scmp.lt.u32.totalorder %s355_s11, %s488_s3 }
 0x1dc   :  { %p361_p7 = pnand %p359_p6, %p356_p5 }
 0x1de   :  { %364 = shalt.err (!%p361_p7)
}
 0x1df   :  { %s369_s15 = smov 128   ;;  %s370_s16 = smov 8  }
 0x1e0   :  { %229 = dma.vmem_to_hbm [thread:$0]  %s224_s7, 256, %s488_s3, [#allocation3], %s369_s15, %s369_s15, %s370_s16  }
 0x1e1   :  { %365 = dma.done.wait [#allocation3], 256  }
 0x1e2   :  { %366 = vsyncadd [#allocation3], 4294967040 }
 0x1e3   :  { %233 = vsyncpa [#allocation3], 1 }

</bundles_post_ra>
